<compile_context>
chip_gen: v5e
topology: v5e:2x2
jax: 0.10.0
libtpu: 0.0.40
codegen_flags: <defaults>
</compile_context>

<pallas_src>
import functools

import jax
import jax.numpy as jnp
import numpy as np
from jax.experimental import pallas as pl
from jax.experimental.pallas import tpu as pltpu


def _spatial_shift_kernel(x_ref, o_ref, *, C):
    """Processes one batch element: a (1, W, L) block with L = H * C."""
    y = x_ref[0]                                   # (W, L)
    Wdim, L = y.shape
    c4 = C // 4

    # --- shifts along W (major axis): whole-row moves, border rows keep value.
    down = jnp.concatenate([y[:1, :], y[:-1, :]], axis=0)      # out[w] = in[w-1]; out[0]  = in[0]
    up   = jnp.concatenate([y[1:, :], y[-1:, :]], axis=0)      # out[w] = in[w+1]; out[-1] = in[-1]

    # --- shifts along H: in the folded layout, h -> h±1 is a lane shift by ±C.
    right = jnp.concatenate([y[:, :C], y[:, :L - C]], axis=1)  # out[., l] = in[., l-C]; first H-col kept
    left  = jnp.concatenate([y[:, C:], y[:, L - C:]], axis=1)  # out[., l] = in[., l+C]; last  H-col kept

    # --- per-lane channel-group select: full-vreg VPU selects, no narrow
    #     lane-dim writes.
    lane = jax.lax.broadcasted_iota(jnp.int32, (Wdim, L), 1)
    c = lane % C                                   # channel index within a pixel
    w_sel = jnp.where(c < c4, down, up)            # groups 0, 1 (W-axis shifts)
    h_sel = jnp.where(c < 3 * c4, right, left)     # groups 2, 3 (H-axis shifts)
    o_ref[0] = jnp.where(c < 2 * c4, w_sel, h_sel).astype(o_ref.dtype)


def spatial_shift(x):
    """x: (B, W, H, C) with C % 4 == 0. Returns the spatially shifted tensor."""
    B, W, H, C = x.shape
    if C % 4 != 0:
        raise ValueError("channel dim must be divisible by 4")
    L = H * C
    xf = x.reshape(B, W, L)                        # free: contiguous collapse

    out = pl.pallas_call(
        functools.partial(_spatial_shift_kernel, C=C),
        out_shape=jax.ShapeDtypeStruct((B, W, L), x.dtype),
        grid_spec=pltpu.PrefetchScalarGridSpec(
            num_scalar_prefetch=0,
            grid=(B,),
            in_specs=[pl.BlockSpec((1, W, L), lambda b: (b, 0, 0))],
            out_specs=pl.BlockSpec((1, W, L), lambda b: (b, 0, 0)),
        ),
        compiler_params=pltpu.CompilerParams(
            dimension_semantics=("parallel",)),
    )(xf)
    return out.reshape(B, W, H, C)


# --- pure-JAX reference (functional, non-cascading shift) ----------------------
def reference(x):
    B, W, H, C = x.shape
    c4 = C // 4
    out = x
    out = out.at[:, 1:, :, :c4].set(x[:, :W - 1, :, :c4])
    out = out.at[:, :W - 1, :, c4:2 * c4].set(x[:, 1:, :, c4:2 * c4])
    out = out.at[:, :, 1:, 2 * c4:3 * c4].set(x[:, :, :H - 1, 2 * c4:3 * c4])
    out = out.at[:, :, :H - 1, 3 * c4:].set(x[:, :, 1:, 3 * c4:])
    return out


if __name__ == "__main__":
    # Module implies (b, w, h, c) with c divisible by 4: batch=2, spatial=16, channels=4.
    B, W, H, C = 2, 16, 16, 4
    key = jax.random.PRNGKey(0)
    x = jax.random.normal(key, (B, W, H, C), dtype=jnp.float32)

    out = jax.block_until_ready(spatial_shift(x))
    ref = jax.block_until_ready(reference(x))

    # Pure data movement -> results must match bit-exactly.
    np.testing.assert_array_equal(np.asarray(out), np.asarray(ref))
    print("KERNEL_OK")
</pallas_src>

<mosaic_0001>
module attributes {stable_mosaic.version = 11 : i64} {
  func.func @_spatial_shift_kernel(%arg0: i32, %arg1: memref<1x16x64xf32, #tpu.memory_space<vmem>>, %arg2: memref<1x16x64xf32, #tpu.memory_space<vmem>>) attributes {dimension_semantics = [#tpu.dimension_semantics<parallel>], iteration_bounds = array<i64: 2>, scalar_prefetch = 0 : i64, scratch_operands = 0 : i64, tpu.core_type = #tpu.core_type<tc>, window_params = [{transform_indices = @transform_0, window_bounds = array<i64: 1, 16, 64>}, {transform_indices = @transform_1, window_bounds = array<i64: 1, 16, 64>}]} {
    %c0 = arith.constant 0 : index
    %c0_0 = arith.constant 0 : index
    %c0_1 = arith.constant 0 : index
    %0 = vector.load %arg1[%c0, %c0_0, %c0_1] : memref<1x16x64xf32, #tpu.memory_space<vmem>>, vector<1x16x64xf32>
    %1 = vector.shape_cast %0 : vector<1x16x64xf32> to vector<16x64xf32>
    %2 = vector.extract_strided_slice %1 {offsets = [0, 0], sizes = [1, 64], strides = [1, 1]} : vector<16x64xf32> to vector<1x64xf32>
    %3 = vector.extract_strided_slice %1 {offsets = [0, 0], sizes = [15, 64], strides = [1, 1]} : vector<16x64xf32> to vector<15x64xf32>
    %4 = tpu.concatenate %2, %3 in 0 : vector<1x64xf32>, vector<15x64xf32> -> vector<16x64xf32>
    %5 = vector.extract_strided_slice %1 {offsets = [1, 0], sizes = [15, 64], strides = [1, 1]} : vector<16x64xf32> to vector<15x64xf32>
    %6 = vector.extract_strided_slice %1 {offsets = [15, 0], sizes = [1, 64], strides = [1, 1]} : vector<16x64xf32> to vector<1x64xf32>
    %7 = tpu.concatenate %5, %6 in 0 : vector<15x64xf32>, vector<1x64xf32> -> vector<16x64xf32>
    %8 = vector.extract_strided_slice %1 {offsets = [0, 0], sizes = [16, 4], strides = [1, 1]} : vector<16x64xf32> to vector<16x4xf32>
    %9 = vector.extract_strided_slice %1 {offsets = [0, 0], sizes = [16, 60], strides = [1, 1]} : vector<16x64xf32> to vector<16x60xf32>
    %10 = tpu.concatenate %8, %9 in 1 : vector<16x4xf32>, vector<16x60xf32> -> vector<16x64xf32>
    %11 = vector.extract_strided_slice %1 {offsets = [0, 4], sizes = [16, 60], strides = [1, 1]} : vector<16x64xf32> to vector<16x60xf32>
    %12 = vector.extract_strided_slice %1 {offsets = [0, 60], sizes = [16, 4], strides = [1, 1]} : vector<16x64xf32> to vector<16x4xf32>
    %13 = tpu.concatenate %11, %12 in 1 : vector<16x60xf32>, vector<16x4xf32> -> vector<16x64xf32>
    %14 = tpu.iota {dimensions = array<i32: 1>} : vector<16x64xi32>
    %c4_i32 = arith.constant 4 : i32
    %c0_i32 = arith.constant 0 : i32
    %15 = arith.cmpi eq, %c4_i32, %c0_i32 : i32
    %c1_i32 = arith.constant 1 : i32
    %16 = arith.select %15, %c1_i32, %c4_i32 : i32
    %17 = vector.broadcast %16 : i32 to vector<16x64xi32>
    %18 = arith.remsi %14, %17 : vector<16x64xi32>
    %c0_i32_2 = arith.constant 0 : i32
    %19 = vector.broadcast %c0_i32_2 : i32 to vector<16x64xi32>
    %20 = arith.cmpi ne, %18, %19 : vector<16x64xi32>
    %c0_i32_3 = arith.constant 0 : i32
    %21 = vector.broadcast %c0_i32_3 : i32 to vector<16x64xi32>
    %22 = arith.cmpi slt, %18, %21 : vector<16x64xi32>
    %c0_i32_4 = arith.constant 0 : i32
    %23 = arith.cmpi slt, %16, %c0_i32_4 : i32
    %24 = vector.broadcast %23 : i1 to vector<16x64xi1>
    %25 = vector.broadcast %24 : vector<16x64xi1> to vector<16x64xi1>
    %26 = arith.xori %22, %25 : vector<16x64xi1>
    %27 = arith.andi %26, %20 : vector<16x64xi1>
    %28 = vector.broadcast %16 : i32 to vector<16x64xi32>
    %29 = arith.addi %18, %28 : vector<16x64xi32>
    %30 = arith.select %27, %29, %18 : vector<16x64xi1>, vector<16x64xi32>
    %c1_i32_5 = arith.constant 1 : i32
    %31 = vector.broadcast %c1_i32_5 : i32 to vector<16x64xi32>
    %32 = arith.cmpi slt, %30, %31 : vector<16x64xi32>
    %33 = arith.select %32, %4, %7 : vector<16x64xi1>, vector<16x64xf32>
    %c3_i32 = arith.constant 3 : i32
    %34 = vector.broadcast %c3_i32 : i32 to vector<16x64xi32>
    %35 = arith.cmpi slt, %30, %34 : vector<16x64xi32>
    %36 = arith.select %35, %10, %13 : vector<16x64xi1>, vector<16x64xf32>
    %c2_i32 = arith.constant 2 : i32
    %37 = vector.broadcast %c2_i32 : i32 to vector<16x64xi32>
    %38 = arith.cmpi slt, %30, %37 : vector<16x64xi32>
    %39 = arith.select %38, %33, %36 : vector<16x64xi1>, vector<16x64xf32>
    %c0_6 = arith.constant 0 : index
    %c0_7 = arith.constant 0 : index
    %c0_8 = arith.constant 0 : index
    %40 = vector.load %arg2[%c0_6, %c0_7, %c0_8] : memref<1x16x64xf32, #tpu.memory_space<vmem>>, vector<1x16x64xf32>
    %41 = vector.shape_cast %40 : vector<1x16x64xf32> to vector<16x64xf32>
    %42 = vector.shape_cast %39 : vector<16x64xf32> to vector<1x16x64xf32>
    tpu.vector_store %arg2[%c0_6, %c0_7, %c0_8], %42 {strides = array<i32>} : memref<1x16x64xf32, #tpu.memory_space<vmem>>, vector<1x16x64xf32>,
    return
  }
  func.func @transform_0(%arg0: i32) -> (i32, i32, i32) {
    %c0_i32 = arith.constant 0 : i32
    %c0_i32_0 = arith.constant 0 : i32
    %c0_i32_1 = arith.constant 0 : i32
    return %arg0, %c0_i32, %c0_i32_0 : i32, i32, i32
  }
  func.func @transform_1(%arg0: i32) -> (i32, i32, i32) {
    %c0_i32 = arith.constant 0 : i32
    %c0_i32_0 = arith.constant 0 : i32
    %c0_i32_1 = arith.constant 0 : i32
    return %arg0, %c0_i32, %c0_i32_0 : i32, i32, i32
  }
}

</mosaic_0001>

<bundles_post_ra>
// kernel: tpu_custom_call.1
= control target key start
LH: loop header
LB: loop body
LE: loop exit
PB: predicated region body
PF: predicated region fallthrough
CT: control target
= control target key end

     0   :  { %6 = vsyncpa [#allocation3], 0  ;;  %s617_s0 = inlined_call_operand.hbm [shape: f32[2,16,64], index: 0, kind: input, shape index: {}]   ;;  %s618_s1 = inlined_call_operand.hbm [shape: f32[2,16,64], index: 1, kind: output, shape index: {}]  }
   0x1   :  { %8 = vsyncpa [#allocation3 + $0x1], 0 }
   0x2   :  { %9 = vsyncpa [#allocation4], 0 }
   0x3   :  { %11 = vsyncpa [#allocation4 + $0x1], 0  ;;  %s470_s6 = smov 0   ;;  %s472_s7 = smov 0  }
   0x4   :  { %s474_s8 = smov 0   ;;  %s476_s9 = smov 0  }
   0x5 LB: > { %s491_s10 = sadd.s32 4294967295, %s452_s9   ;;  %s288_s11 = sadd.s32 4294967294, %s452_s9   ;;  %s452_s9 = sphi %s476_s9, %s628_s9   ;;  %s448_s8 = sphi %s474_s8, %s627_s8   ;;  %s444_s7 = sphi %s472_s7, %s626_s7   ;;  %s440_s6 = sphi %s470_s6, %s625_s6  }
   0x6   : > { %s495_s12 = sadd.s32 1, %s452_s9   ;;  %s24_s13 = sadd.s32 1, %s448_s8 }
   0x7   : > { %s21_s14 = ssub.s32 %s452_s9, %s495_s12  ;;  %p31_p0 = scmp.ne.s32.totalorder %s448_s8, %s444_s7 }
   0x8   : > { %p22_p1 = scmp.eq.s32.totalorder %s21_s14, 0  ;;  %p32_p2 = scmp.eq.s32.totalorder %s452_s9, 0 }
   0x9   : > { %p37_p3 = scmp.ne.s32.totalorder %s444_s7, %s440_s6  ;;  %p38_p4 = scmp.eq.s32.totalorder %s491_s10, 0 }
   0xa   : > { %s507_s15 = scalar_select %p22_p1, %s448_s8, %s24_s13  }
   0xb   : > { %p509_p5 = por %p32_p2, %p31_p0  ;;  %p513_p6 = por %p38_p4, %p37_p3 }
   0xc   : > { %p61_p7 = scmp.eq.s32.totalorder %s491_s10, 1  ;;  %p67_p8 = scmp.eq.s32.totalorder %s288_s11, 1 }
   0xd   : > { %p316_p10 = scmp.lt.s32.totalorder %s452_s9, 2  ;;  %s87_s20 = sand.u32 1, %s448_s8  }
   0xe   : > { %p520_p11 = por %p61_p7, %p31_p0  ;;  %p524_p12 = por %p67_p8, %p37_p3 }
   0xf   : > { %s302_s21 = sshll.u32 %s452_s9, 4  ;;  %s291_s22 = sshll.u32 %s87_s20, 4 }
  0x10   : > { %s96_s25 = scalar_lea.hbm %s617_s0, %s302_s21  ;;  %s91_s27 = scalar_lea.vmem [#allocation2], %s291_s22 }
  0x11   : > { %s97_s26 = sshll.u32 %s96_s25, 4  ;;  %s99_s28 = sshll.u32 %s91_s27, 4  ;;  %s98_s26 = int_to_ptr.hbm [resolvable:$true] %s97_s26  ;;  %s100_s28 = int_to_ptr.vmem [resolvable:$true] %s99_s28 }
  0x12   : > { %p535_p13 = pnand %p316_p10, %p509_p5  ;;  %p294_p0 = scmp.ge.s32.totalorder %s452_s9, 1 }
  0x13   : > { %p107_p1 = scmp.lt.s32.totalorder %s452_s9, 3  ;;  %s88_s30 = scalar_lea.sflag [#allocation3], %s87_s20 }
  0x14   : > { %s356_s2 = sshra.s32 %s98_s26, 4  ;;  %p360_p3 = pneg %p535_p13  ;;  %s357_s2 = int_to_ptr.hbm [resolvable:$true] %s356_s2 }
  0x15   : > { %s358_s3 = scalar_lea.hbm %s357_s2, 16  ;;  %s363_s11 = scalar_lea.hbm %s617_s0, 32 }
  0x16   : > { %p359_p2 = scmp.ne.s32.totalorder %s357_s2, %s358_s3  ;;  %p364_p5 = scmp.lt.s32.totalorder %s357_s2, %s617_s0 }
  0x17   : > { %p365_p8 = scmp.lt.s32.totalorder %s363_s11, %s358_s3 }
  0x18   : > { %p361_p4 = pnand %p360_p3, %p359_p2 }
  0x19   : > { %p366_p10 = por %p365_p8, %p364_p5 }
  0x1a   : > { %p362_p7 = pneg %p361_p4 }
  0x1c   : > { %p367_p9 = pnand %p366_p10, %p362_p7 }
  0x1e   : > { %370 = shalt.err (!%p367_p9)
}
  0x1f   : > { %s454_s16 = smov 128   ;;  %s455_s20 = smov 8  }
  0x20   : > { %311 = dma.hbm_to_vmem [thread:$0]  (!%p535_p13), %s98_s26, 256, %s100_s28, %s88_s30, %s454_s16, %s454_s16, %s455_s20  }
  0x21   : > { %p108_p2 = pnand %p294_p0, %p107_p1 }
  0x22   : > { %s556_s21 = sand.u32 (!%p108_p2), 1, %s444_s7  }
  0x23   : > { %111 = sbr.rel (%p108_p2) target bundleno = 172 (0xac), region = 24  ;;  %s295_s22 = sshll.u32 (!%p108_p2), %s556_s21, 4 }
  0x24   : > { %s114_s23 = scalar_lea.sflag (!%p108_p2), [#allocation3], %s556_s21  ;;  %s117_s24 = scalar_lea.vmem (!%p108_p2), [#allocation2], %s295_s22 }
  0x28   : > { %431 = dma.done.wait (%p513_p6), %s114_s23, 256  }
  0x29   : > { %433 = vsyncadd (%p513_p6), %s114_s23, 4294967040  ;;  %v137_v0 = vld [vmem:[%s117_s24] sm:$0xff]  ;;  %s456_s25 = smov 124   ;;  %s457_s26 = smov 4   ;;  %v138_v1 = vld [vmem:[%s117_s24 + $0x8] sm:$0xff]  ;;  %v173_v2 = vlaneseq  ;;  %vm141_vm0 = vcmask 1040384  }
  0x2a   : > { %164 = vrot.lane.b32.xlu1 %v137_v0, %s456_s25  ;;  %155 = vrot.lane.b32.xlu0 %v137_v0, %s457_s26  ;;  %v150_v4 = vrot.slane %v138_v1, 1  ;;  %v142_v6 = vrot.slane %v137_v0, 7  ;;  %v149_v7 = vrot.slane %v137_v0, 1  ;;  %vm148_vm1 = vcmask 1046528   ;;  %s303_s17 = sshll.u32 %s491_s10, 4  ;;  %s136_s30 = scalar_lea.vmem [#allocation5], %s295_s22 }
  0x2b   : > { %v174_v3 = vand.u32 127, %v173_v2  ;;  %vm170_vm3 = vcmask 490496   ;;  %vm161_vm4 = vcmask 31744   ;;  %vm196_vm7 = vcmask 523264   ;;  %s211_s29 = scalar_lea.hbm %s618_s1, %s303_s17  ;;  %s212_s10 = sshll.u32 %s136_s30, 4  ;;  %s213_s10 = int_to_ptr.vmem [resolvable:$true] %s212_s10 }
  0x2c   : > { %v147_v8 = vsel %vm141_vm0, %v137_v0, %v142_v6  ;;  %v151_v9 = vsel %vm148_vm1, %v149_v7, %v150_v4  ;;  %v143_v15 = vrot.slane %v138_v1, 7  ;;  %v154_v18 = vsel %vm148_vm1, %v150_v4, %v138_v1  ;;  %s214_s2 = sshll.u32 %s211_s29, 4  ;;  %s200_s3 = scalar_lea.sflag [#allocation4], %s556_s21  ;;  %s215_s2 = int_to_ptr.hbm [resolvable:$true] %s214_s2 }
  0x2d   : > { %v179_v5 = vand.u32 3, %v174_v3  ;;  %s400_s4 = sshra.s32 %s215_s2, 4  ;;  %s406_s14 = scalar_lea.hbm %s618_s1, 32  ;;  %s401_s4 = int_to_ptr.hbm [resolvable:$true] %s400_s4 }
  0x2e   : > { %v144_v19 = vsel %vm141_vm0, %v142_v6, %v143_v15  ;;  %s402_s5 = scalar_lea.hbm %s401_s4, 16  ;;  %p407_p0 = scmp.lt.s32.totalorder %s401_s4, %s618_s1 }
  0x2f   : > { %vm187_vm2 = vcmp.lt.s32.totalorder %v179_v5, 1  ;;  %vm190_vm5 = vcmp.lt.s32.totalorder %v179_v5, 3  ;;  %vm193_vm6 = vcmp.lt.s32.totalorder %v179_v5, 2  ;;  %p403_p6 = scmp.ne.s32.totalorder %s401_s4, %s402_s5  ;;  %p408_p1 = scmp.lt.s32.totalorder %s406_s14, %s402_s5 }
  0x30   : > { %v188_v12 = vsel %vm187_vm2, %v147_v8, %v151_v9  ;;  %v189_v22 = vsel %vm187_vm2, %v144_v19, %v154_v18 }
  0x31   : > { %p404_p9 = pnand %p403_p6, %p520_p11  ;;  %p409_p3 = por %p408_p1, %p407_p0 }
  0x32   : > { %166 = vrot.lane.b32.xlu1 %v138_v1, %s456_s25  ;;  %157 = vrot.lane.b32.xlu0 %v138_v1, %s457_s26 }
  0x33   : > { %p405_p13 = pneg %p404_p9 }
  0x35   : > { %p410_p4 = pnand %p409_p3, %p405_p13 }
  0x9c   : > { %v165_v10 = vpop.permute.xlu1 %164  ;;  %v156_v11 = vpop.permute.xlu0 %155 }
  0x9d   : > { %v171_v13 = vsel %vm170_vm3, %v165_v10, %v137_v0  ;;  %v162_v14 = vsel %vm161_vm4, %v137_v0, %v156_v11 }
  0x9e   : > { %v191_v16 = vsel %vm190_vm5, %v162_v14, %v171_v13 }
  0x9f   : > { %v194_v17 = vsel %vm193_vm6, %v188_v12, %v191_v16 }
  0xa0   : > { %197 = vst.msk [vmem:[%s136_s30] sm:$0xff] %vm196_vm7, %v194_v17 }
  0xa4   : > { %v167_v20 = vpop.permute.xlu1 %166  ;;  %v158_v21 = vpop.permute.xlu0 %157 }
  0xa5   : > { %v172_v23 = vsel %vm170_vm3, %v167_v20, %v138_v1  ;;  %v163_v24 = vsel %vm161_vm4, %v138_v1, %v158_v21 }
  0xa6   : > { %v192_v25 = vsel %vm190_vm5, %v163_v24, %v172_v23 }
  0xa7   : > { %v195_v26 = vsel %vm193_vm6, %v189_v22, %v192_v25 }
  0xa8   : > { %198 = vst.msk [vmem:[%s136_s30 + $0x8] sm:$0xff] %vm196_vm7, %v195_v26 }
  0xa9   : > { %413 = shalt.err (!%p410_p4)
}
  0xaa   : > { %s458_s21 = smov 128   ;;  %s459_s22 = smov 8  }
  0xab   : > { %306 = dma.vmem_to_hbm [thread:$0]  (%p520_p11), %s213_s10, 256, %s215_s2, %s200_s3, %s458_s21, %s458_s21, %s459_s22  }
  0xac PF: > { %s229_s23 = sand.u32 1, %s440_s6   ;;  %p624_p7 = scmp.ge.s32.totalorder %s452_s9, 2 }
  0xad   : > { %s230_s24 = scalar_lea.sflag [#allocation4], %s229_s23 }
  0xae   : > { %p313_p5 = pnand %p624_p7, %p524_p12 }
  0xb0   : > { %p314_p8 = pneg %p313_p5 }
  0xb2   : > { %435 = dma.done.wait (%p314_p8), %s230_s24, 256  }
  0xb3   : > { %437 = vsyncadd (%p314_p8), %s230_s24, 4294967040  ;;  %p14_p10 = scmp.ge.s32.totalorder %s495_s12, 4   ;;  %s625_s6 = smov %s444_s7 }
  0xb4   : > { %s626_s7 = smov %s448_s8  ;;  %s627_s8 = smov %s507_s15 }
  0xb5   : > { %s628_s9 = smov %s495_s12  ;;  %16 = sbr.rel (!%p14_p10) target bundleno = 5 (0x5), region = 69 }
  0xba   :  { %236 = vsyncpa [#allocation3], 1 }
  0xbb   :  { %238 = vsyncpa [#allocation3 + $0x1], 1 }
  0xbc   :  { %239 = vsyncpa [#allocation4], 1 }
  0xbd   :  { %241 = vsyncpa [#allocation4 + $0x1], 1 }

</bundles_post_ra>
